<compile_context>
chip_gen: v5e
topology: v5e:2x2
jax: 0.10.0
libtpu: 0.0.40
codegen_flags: <defaults>
</compile_context>

<pallas_src>
import functools

import jax
import jax.numpy as jnp
from jax import lax
from jax.experimental import pallas as pl
from jax.experimental.pallas import tpu as pltpu

LANES = 128
STRIP = 8                      # one f32 vreg worth of sublanes
MAX_TILE_ROWS = 4096           # upper cap on rows per grid step
VMEM_BUDGET_BYTES = 12 << 20   # double-buffer budget, safe on v5e's 16 MiB default


def _get_params_kernel(w1_ref, b1_ref, w2_ref, b2_ref, w3_ref, b3_ref,
                       e_ref, o_ref, *, H1, H2, outC):
    # e_ref: (tr, 128) f32, batch mapped onto sublanes x lanes (lane-dense).
    # Weight refs are grid-invariant SMEM vectors; hoist ALL scalar reads out
    # of the strip loop so the loop body is pure vector math.
    w1 = [w1_ref[j] for j in range(H1)]
    b1 = [b1_ref[j] for j in range(H1)]
    w2 = [[w2_ref[k * H1 + j] for j in range(H1)] for k in range(H2)]
    b2 = [b2_ref[k] for k in range(H2)]
    w3 = [[w3_ref[c * H2 + k] for k in range(H2)] for c in range(outC)]
    b3 = [b3_ref[c] for c in range(outC)]          # already includes iniT

    tr = e_ref.shape[0]
    n_strips = tr // STRIP

    def strip_body(s, carry):
        r = pl.multiple_of(s * STRIP, STRIP)
        e = e_ref[pl.ds(r, STRIP), :]               # one (8,128) vreg

        # Level 1: 1 -> H1, ReLU.  h1[j] = relu(e * w1[j,0] + b1[0,j])
        h1 = [jnp.maximum(e * w1[j] + b1[j], 0.0) for j in range(H1)]

        # Level 2: H1 -> H2, ReLU.  h2[k] = relu(sum_j h1[j]*w2[k,j] + b2[0,k])
        h2 = []
        for k in range(H2):
            acc = h1[0] * w2[k][0] + b2[k]
            for j in range(1, H1):
                acc = acc + h1[j] * w2[k][j]
            h2.append(jnp.maximum(acc, 0.0))

        # Level 3: H2 -> outC (no activation); iniT pre-folded into b3.
        for c in range(outC):
            acc = h2[0] * w3[c][0] + b3[c]
            for k in range(1, H2):
                acc = acc + h2[k] * w3[c][k]
            o_ref[c, pl.ds(r, STRIP), :] = acc      # lane-dense (8,128) store
        return carry

    lax.fori_loop(0, n_strips, strip_body, 0, unroll=min(8, n_strips))


def get_params_mlp(e, w1, b1, w2, b2, w3, b3, iniT):
    """e: (B, 1) f32.  Params in the original PyTorch shapes.  -> (B, outC) f32."""
    B = e.shape[0]
    H1 = w1.shape[0]          # w1: (H1, 1)
    H2 = w2.shape[0]          # w2: (H2, H1)
    outC = w3.shape[0]        # w3: (outC, H2)
    assert w1.shape == (H1, 1) and b1.shape == (1, H1)
    assert w2.shape == (H2, H1) and b2.shape == (1, H2)
    assert w3.shape == (outC, H2) and b3.shape == (1, outC)
    assert iniT.shape == (1,)

    # Flatten tiny parameters once in the wrapper; fold iniT into b3.
    w1f = w1.reshape(-1).astype(jnp.float32)                          # (H1,)
    b1f = b1.reshape(-1).astype(jnp.float32)                          # (H1,)
    w2f = w2.reshape(-1).astype(jnp.float32)                          # (H2*H1,)
    b2f = b2.reshape(-1).astype(jnp.float32)                          # (H2,)
    w3f = w3.reshape(-1).astype(jnp.float32)                          # (outC*H2,)
    b3f = (b3.reshape(-1) + iniT.reshape(-1)[0]).astype(jnp.float32)  # (outC,)

    # ---- Tile-size selection ------------------------------------------------
    rows = -(-B // LANES)                      # 128-lane rows of batch
    # Double-buffered footprint per step ~ tr * 128 * 4 * (1 + outC) * 2 bytes.
    bytes_per_row_db = 2 * LANES * 4 * (1 + outC)
    vmem_cap_rows = max(STRIP, (VMEM_BUDGET_BYTES // bytes_per_row_db) // STRIP * STRIP)
    max_tr = min(MAX_TILE_ROWS, vmem_cap_rows)
    # Balanced split; >= 2 roughly-equal steps when rows >= 16 (v7x dual-TC).
    min_steps = 2 if rows >= 16 else 1
    n_steps = max(min_steps, -(-rows // max_tr))
    tr = ((-(-rows // n_steps) + STRIP - 1) // STRIP) * STRIP
    n_steps = -(-rows // tr)
    rows_pad = n_steps * tr
    b_pad = rows_pad * LANES

    # Single-pass pad of e onto the (rows_pad, 128) batch grid.
    e_flat = jnp.pad(e[:, 0].astype(jnp.float32), (0, b_pad - B))
    e2d = e_flat.reshape(rows_pad, LANES)

    smem_spec = pl.BlockSpec(memory_space=pltpu.MemorySpace.SMEM)
    kernel = functools.partial(_get_params_kernel, H1=H1, H2=H2, outC=outC)

    out = pl.pallas_call(
        kernel,
        out_shape=jax.ShapeDtypeStruct((outC, rows_pad, LANES), jnp.float32),
        grid=(n_steps,),
        in_specs=[smem_spec] * 6 + [
            pl.BlockSpec((tr, LANES), lambda i: (i, 0)),
        ],
        out_specs=pl.BlockSpec((outC, tr, LANES), lambda i: (0, i, 0)),
        compiler_params=pltpu.CompilerParams(
            dimension_semantics=("parallel",)),
        cost_estimate=pl.CostEstimate(
            flops=2 * b_pad * (H1 + H1 * H2 + H2 * outC),
            transcendentals=0,
            bytes_accessed=4 * (b_pad + outC * b_pad
                                + H1 + H1 + H2 * H1 + H2 + outC * H2 + outC),
        ),
    )(w1f, b1f, w2f, b2f, w3f, b3f, e2d)

    # (outC, rows_pad, 128) -> (B, outC); slice off batch padding.
    # For outC == 1 the .T is effectively a reshape (free).
    # TODO(synk): for outC > 1, expose the (outC, B) layout to the consumer (or
    # fuse the transpose) to avoid one extra HBM pass over the output.
    return out.reshape(outC, b_pad)[:, :B].T


def reference(e, w1, b1, w2, b2, w3, b3, iniT):
    h = jnp.maximum(jnp.tensordot(e, w1, axes=([1], [1])) + b1, 0.0)
    h = jnp.maximum(jnp.tensordot(h, w2, axes=([1], [1])) + b2, 0.0)
    return jnp.tensordot(h, w3, axes=([1], [1])) + b3 + iniT


if __name__ == "__main__":
    # GetParams(iniT=0.5, outC=1): NLTras = [ParamsNNLevel(1,5), ReLU,
    # ParamsNNLevel(5,5), ReLU, ParamsNNLevel(5,1)], plus scalar iniT.
    H1, H2, outC = 5, 5, 1
    iniT_val = 0.5
    batchsize = 64  # small demo batch

    key = jax.random.PRNGKey(0)
    k_e, k1, k2, k3 = jax.random.split(key, 4)

    # ParamsNNLevel init: w = (randn(n, m) + 1) / m, b = -0.1 * ones(1, n)
    w1 = (jax.random.normal(k1, (H1, 1), jnp.float32) + 1.0) / 1.0
    b1 = jnp.full((1, H1), -0.1, jnp.float32)
    w2 = (jax.random.normal(k2, (H2, H1), jnp.float32) + 1.0) / H1
    b2 = jnp.full((1, H2), -0.1, jnp.float32)
    w3 = (jax.random.normal(k3, (outC, H2), jnp.float32) + 1.0) / H2
    b3 = jnp.full((1, outC), -0.1, jnp.float32)
    iniT = jnp.array([iniT_val], jnp.float32)

    # GetParams.forward draws e = randn(batchsize, 1) internally; we draw it
    # deterministically in the wrapper so the kernel and reference share it.
    e = jax.random.normal(k_e, (batchsize, 1), jnp.float32)

    out = get_params_mlp(e, w1, b1, w2, b2, w3, b3, iniT)
    out = jax.block_until_ready(out)

    ref = reference(e, w1, b1, w2, b2, w3, b3, iniT)
    assert out.shape == (batchsize, outC)
    assert jnp.allclose(out, ref, atol=1e-5, rtol=1e-5), "mismatch vs reference"

    print("KERNEL_OK")
</pallas_src>

<mosaic_0001>
module attributes {stable_mosaic.version = 11 : i64} {
  func.func @_get_params_kernel(%arg0: i32, %arg1: memref<5xf32, #tpu.memory_space<smem>>, %arg2: memref<5xf32, #tpu.memory_space<smem>>, %arg3: memref<25xf32, #tpu.memory_space<smem>>, %arg4: memref<5xf32, #tpu.memory_space<smem>>, %arg5: memref<5xf32, #tpu.memory_space<smem>>, %arg6: memref<1xf32, #tpu.memory_space<smem>>, %arg7: memref<8x128xf32, #tpu.memory_space<vmem>>, %arg8: memref<1x8x128xf32, #tpu.memory_space<vmem>>) attributes {dimension_semantics = [#tpu.dimension_semantics<parallel>], iteration_bounds = array<i64: 1>, scalar_prefetch = 0 : i64, scratch_operands = 0 : i64, tpu.core_type = #tpu.core_type<tc>, window_params = [{transform_indices = @transform_0, window_bounds = array<i64: 5>}, {transform_indices = @transform_1, window_bounds = array<i64: 5>}, {transform_indices = @transform_2, window_bounds = array<i64: 25>}, {transform_indices = @transform_3, window_bounds = array<i64: 5>}, {transform_indices = @transform_4, window_bounds = array<i64: 5>}, {transform_indices = @transform_5, window_bounds = array<i64: 1>}, {transform_indices = @transform_6, window_bounds = array<i64: 8, 128>}, {transform_indices = @transform_7, window_bounds = array<i64: 1, 8, 128>}]} {
    %c0 = arith.constant 0 : index
    %0 = memref.load %arg1[%c0] : memref<5xf32, #tpu.memory_space<smem>>
    %c1 = arith.constant 1 : index
    %1 = memref.load %arg1[%c1] : memref<5xf32, #tpu.memory_space<smem>>
    %c2 = arith.constant 2 : index
    %2 = memref.load %arg1[%c2] : memref<5xf32, #tpu.memory_space<smem>>
    %c3 = arith.constant 3 : index
    %3 = memref.load %arg1[%c3] : memref<5xf32, #tpu.memory_space<smem>>
    %c4 = arith.constant 4 : index
    %4 = memref.load %arg1[%c4] : memref<5xf32, #tpu.memory_space<smem>>
    %c0_0 = arith.constant 0 : index
    %5 = memref.load %arg2[%c0_0] : memref<5xf32, #tpu.memory_space<smem>>
    %c1_1 = arith.constant 1 : index
    %6 = memref.load %arg2[%c1_1] : memref<5xf32, #tpu.memory_space<smem>>
    %c2_2 = arith.constant 2 : index
    %7 = memref.load %arg2[%c2_2] : memref<5xf32, #tpu.memory_space<smem>>
    %c3_3 = arith.constant 3 : index
    %8 = memref.load %arg2[%c3_3] : memref<5xf32, #tpu.memory_space<smem>>
    %c4_4 = arith.constant 4 : index
    %9 = memref.load %arg2[%c4_4] : memref<5xf32, #tpu.memory_space<smem>>
    %c0_5 = arith.constant 0 : index
    %10 = memref.load %arg3[%c0_5] : memref<25xf32, #tpu.memory_space<smem>>
    %c1_6 = arith.constant 1 : index
    %11 = memref.load %arg3[%c1_6] : memref<25xf32, #tpu.memory_space<smem>>
    %c2_7 = arith.constant 2 : index
    %12 = memref.load %arg3[%c2_7] : memref<25xf32, #tpu.memory_space<smem>>
    %c3_8 = arith.constant 3 : index
    %13 = memref.load %arg3[%c3_8] : memref<25xf32, #tpu.memory_space<smem>>
    %c4_9 = arith.constant 4 : index
    %14 = memref.load %arg3[%c4_9] : memref<25xf32, #tpu.memory_space<smem>>
    %c5 = arith.constant 5 : index
    %15 = memref.load %arg3[%c5] : memref<25xf32, #tpu.memory_space<smem>>
    %c6 = arith.constant 6 : index
    %16 = memref.load %arg3[%c6] : memref<25xf32, #tpu.memory_space<smem>>
    %c7 = arith.constant 7 : index
    %17 = memref.load %arg3[%c7] : memref<25xf32, #tpu.memory_space<smem>>
    %c8 = arith.constant 8 : index
    %18 = memref.load %arg3[%c8] : memref<25xf32, #tpu.memory_space<smem>>
    %c9 = arith.constant 9 : index
    %19 = memref.load %arg3[%c9] : memref<25xf32, #tpu.memory_space<smem>>
    %c10 = arith.constant 10 : index
    %20 = memref.load %arg3[%c10] : memref<25xf32, #tpu.memory_space<smem>>
    %c11 = arith.constant 11 : index
    %21 = memref.load %arg3[%c11] : memref<25xf32, #tpu.memory_space<smem>>
    %c12 = arith.constant 12 : index
    %22 = memref.load %arg3[%c12] : memref<25xf32, #tpu.memory_space<smem>>
    %c13 = arith.constant 13 : index
    %23 = memref.load %arg3[%c13] : memref<25xf32, #tpu.memory_space<smem>>
    %c14 = arith.constant 14 : index
    %24 = memref.load %arg3[%c14] : memref<25xf32, #tpu.memory_space<smem>>
    %c15 = arith.constant 15 : index
    %25 = memref.load %arg3[%c15] : memref<25xf32, #tpu.memory_space<smem>>
    %c16 = arith.constant 16 : index
    %26 = memref.load %arg3[%c16] : memref<25xf32, #tpu.memory_space<smem>>
    %c17 = arith.constant 17 : index
    %27 = memref.load %arg3[%c17] : memref<25xf32, #tpu.memory_space<smem>>
    %c18 = arith.constant 18 : index
    %28 = memref.load %arg3[%c18] : memref<25xf32, #tpu.memory_space<smem>>
    %c19 = arith.constant 19 : index
    %29 = memref.load %arg3[%c19] : memref<25xf32, #tpu.memory_space<smem>>
    %c20 = arith.constant 20 : index
    %30 = memref.load %arg3[%c20] : memref<25xf32, #tpu.memory_space<smem>>
    %c21 = arith.constant 21 : index
    %31 = memref.load %arg3[%c21] : memref<25xf32, #tpu.memory_space<smem>>
    %c22 = arith.constant 22 : index
    %32 = memref.load %arg3[%c22] : memref<25xf32, #tpu.memory_space<smem>>
    %c23 = arith.constant 23 : index
    %33 = memref.load %arg3[%c23] : memref<25xf32, #tpu.memory_space<smem>>
    %c24 = arith.constant 24 : index
    %34 = memref.load %arg3[%c24] : memref<25xf32, #tpu.memory_space<smem>>
    %c0_10 = arith.constant 0 : index
    %35 = memref.load %arg4[%c0_10] : memref<5xf32, #tpu.memory_space<smem>>
    %c1_11 = arith.constant 1 : index
    %36 = memref.load %arg4[%c1_11] : memref<5xf32, #tpu.memory_space<smem>>
    %c2_12 = arith.constant 2 : index
    %37 = memref.load %arg4[%c2_12] : memref<5xf32, #tpu.memory_space<smem>>
    %c3_13 = arith.constant 3 : index
    %38 = memref.load %arg4[%c3_13] : memref<5xf32, #tpu.memory_space<smem>>
    %c4_14 = arith.constant 4 : index
    %39 = memref.load %arg4[%c4_14] : memref<5xf32, #tpu.memory_space<smem>>
    %c0_15 = arith.constant 0 : index
    %40 = memref.load %arg5[%c0_15] : memref<5xf32, #tpu.memory_space<smem>>
    %c1_16 = arith.constant 1 : index
    %41 = memref.load %arg5[%c1_16] : memref<5xf32, #tpu.memory_space<smem>>
    %c2_17 = arith.constant 2 : index
    %42 = memref.load %arg5[%c2_17] : memref<5xf32, #tpu.memory_space<smem>>
    %c3_18 = arith.constant 3 : index
    %43 = memref.load %arg5[%c3_18] : memref<5xf32, #tpu.memory_space<smem>>
    %c4_19 = arith.constant 4 : index
    %44 = memref.load %arg5[%c4_19] : memref<5xf32, #tpu.memory_space<smem>>
    %c0_20 = arith.constant 0 : index
    %45 = memref.load %arg6[%c0_20] : memref<1xf32, #tpu.memory_space<smem>>
    %c0_i32 = arith.constant 0 : i32
    %c8_i32 = arith.constant 8 : i32
    %46 = arith.muli %c0_i32, %c8_i32 : i32
    %47 = tpu.assume_multiple %46, 8 : i32
    %48 = arith.index_cast %47 : i32 to index
    %c0_21 = arith.constant 0 : index
    %49 = vector.load %arg7[%48, %c0_21] : memref<8x128xf32, #tpu.memory_space<vmem>>, vector<8x128xf32>
    %50 = vector.broadcast %0 : f32 to vector<8x128xf32>
    %51 = arith.mulf %49, %50 : vector<8x128xf32>
    %52 = vector.broadcast %5 : f32 to vector<8x128xf32>
    %53 = arith.addf %51, %52 : vector<8x128xf32>
    %cst = arith.constant 0.000000e+00 : f32
    %54 = vector.broadcast %cst : f32 to vector<8x128xf32>
    %55 = arith.maximumf %53, %54 : vector<8x128xf32>
    %56 = vector.broadcast %1 : f32 to vector<8x128xf32>
    %57 = arith.mulf %49, %56 : vector<8x128xf32>
    %58 = vector.broadcast %6 : f32 to vector<8x128xf32>
    %59 = arith.addf %57, %58 : vector<8x128xf32>
    %cst_22 = arith.constant 0.000000e+00 : f32
    %60 = vector.broadcast %cst_22 : f32 to vector<8x128xf32>
    %61 = arith.maximumf %59, %60 : vector<8x128xf32>
    %62 = vector.broadcast %2 : f32 to vector<8x128xf32>
    %63 = arith.mulf %49, %62 : vector<8x128xf32>
    %64 = vector.broadcast %7 : f32 to vector<8x128xf32>
    %65 = arith.addf %63, %64 : vector<8x128xf32>
    %cst_23 = arith.constant 0.000000e+00 : f32
    %66 = vector.broadcast %cst_23 : f32 to vector<8x128xf32>
    %67 = arith.maximumf %65, %66 : vector<8x128xf32>
    %68 = vector.broadcast %3 : f32 to vector<8x128xf32>
    %69 = arith.mulf %49, %68 : vector<8x128xf32>
    %70 = vector.broadcast %8 : f32 to vector<8x128xf32>
    %71 = arith.addf %69, %70 : vector<8x128xf32>
    %cst_24 = arith.constant 0.000000e+00 : f32
    %72 = vector.broadcast %cst_24 : f32 to vector<8x128xf32>
    %73 = arith.maximumf %71, %72 : vector<8x128xf32>
    %74 = vector.broadcast %4 : f32 to vector<8x128xf32>
    %75 = arith.mulf %49, %74 : vector<8x128xf32>
    %76 = vector.broadcast %9 : f32 to vector<8x128xf32>
    %77 = arith.addf %75, %76 : vector<8x128xf32>
    %cst_25 = arith.constant 0.000000e+00 : f32
    %78 = vector.broadcast %cst_25 : f32 to vector<8x128xf32>
    %79 = arith.maximumf %77, %78 : vector<8x128xf32>
    %80 = vector.broadcast %10 : f32 to vector<8x128xf32>
    %81 = arith.mulf %55, %80 : vector<8x128xf32>
    %82 = vector.broadcast %35 : f32 to vector<8x128xf32>
    %83 = arith.addf %81, %82 : vector<8x128xf32>
    %84 = vector.broadcast %11 : f32 to vector<8x128xf32>
    %85 = arith.mulf %61, %84 : vector<8x128xf32>
    %86 = arith.addf %83, %85 : vector<8x128xf32>
    %87 = vector.broadcast %12 : f32 to vector<8x128xf32>
    %88 = arith.mulf %67, %87 : vector<8x128xf32>
    %89 = arith.addf %86, %88 : vector<8x128xf32>
    %90 = vector.broadcast %13 : f32 to vector<8x128xf32>
    %91 = arith.mulf %73, %90 : vector<8x128xf32>
    %92 = arith.addf %89, %91 : vector<8x128xf32>
    %93 = vector.broadcast %14 : f32 to vector<8x128xf32>
    %94 = arith.mulf %79, %93 : vector<8x128xf32>
    %95 = arith.addf %92, %94 : vector<8x128xf32>
    %cst_26 = arith.constant 0.000000e+00 : f32
    %96 = vector.broadcast %cst_26 : f32 to vector<8x128xf32>
    %97 = arith.maximumf %95, %96 : vector<8x128xf32>
    %98 = vector.broadcast %15 : f32 to vector<8x128xf32>
    %99 = arith.mulf %55, %98 : vector<8x128xf32>
    %100 = vector.broadcast %36 : f32 to vector<8x128xf32>
    %101 = arith.addf %99, %100 : vector<8x128xf32>
    %102 = vector.broadcast %16 : f32 to vector<8x128xf32>
    %103 = arith.mulf %61, %102 : vector<8x128xf32>
    %104 = arith.addf %101, %103 : vector<8x128xf32>
    %105 = vector.broadcast %17 : f32 to vector<8x128xf32>
    %106 = arith.mulf %67, %105 : vector<8x128xf32>
    %107 = arith.addf %104, %106 : vector<8x128xf32>
    %108 = vector.broadcast %18 : f32 to vector<8x128xf32>
    %109 = arith.mulf %73, %108 : vector<8x128xf32>
    %110 = arith.addf %107, %109 : vector<8x128xf32>
    %111 = vector.broadcast %19 : f32 to vector<8x128xf32>
    %112 = arith.mulf %79, %111 : vector<8x128xf32>
    %113 = arith.addf %110, %112 : vector<8x128xf32>
    %cst_27 = arith.constant 0.000000e+00 : f32
    %114 = vector.broadcast %cst_27 : f32 to vector<8x128xf32>
    %115 = arith.maximumf %113, %114 : vector<8x128xf32>
    %116 = vector.broadcast %20 : f32 to vector<8x128xf32>
    %117 = arith.mulf %55, %116 : vector<8x128xf32>
    %118 = vector.broadcast %37 : f32 to vector<8x128xf32>
    %119 = arith.addf %117, %118 : vector<8x128xf32>
    %120 = vector.broadcast %21 : f32 to vector<8x128xf32>
    %121 = arith.mulf %61, %120 : vector<8x128xf32>
    %122 = arith.addf %119, %121 : vector<8x128xf32>
    %123 = vector.broadcast %22 : f32 to vector<8x128xf32>
    %124 = arith.mulf %67, %123 : vector<8x128xf32>
    %125 = arith.addf %122, %124 : vector<8x128xf32>
    %126 = vector.broadcast %23 : f32 to vector<8x128xf32>
    %127 = arith.mulf %73, %126 : vector<8x128xf32>
    %128 = arith.addf %125, %127 : vector<8x128xf32>
    %129 = vector.broadcast %24 : f32 to vector<8x128xf32>
    %130 = arith.mulf %79, %129 : vector<8x128xf32>
    %131 = arith.addf %128, %130 : vector<8x128xf32>
    %cst_28 = arith.constant 0.000000e+00 : f32
    %132 = vector.broadcast %cst_28 : f32 to vector<8x128xf32>
    %133 = arith.maximumf %131, %132 : vector<8x128xf32>
    %134 = vector.broadcast %25 : f32 to vector<8x128xf32>
    %135 = arith.mulf %55, %134 : vector<8x128xf32>
    %136 = vector.broadcast %38 : f32 to vector<8x128xf32>
    %137 = arith.addf %135, %136 : vector<8x128xf32>
    %138 = vector.broadcast %26 : f32 to vector<8x128xf32>
    %139 = arith.mulf %61, %138 : vector<8x128xf32>
    %140 = arith.addf %137, %139 : vector<8x128xf32>
    %141 = vector.broadcast %27 : f32 to vector<8x128xf32>
    %142 = arith.mulf %67, %141 : vector<8x128xf32>
    %143 = arith.addf %140, %142 : vector<8x128xf32>
    %144 = vector.broadcast %28 : f32 to vector<8x128xf32>
    %145 = arith.mulf %73, %144 : vector<8x128xf32>
    %146 = arith.addf %143, %145 : vector<8x128xf32>
    %147 = vector.broadcast %29 : f32 to vector<8x128xf32>
    %148 = arith.mulf %79, %147 : vector<8x128xf32>
    %149 = arith.addf %146, %148 : vector<8x128xf32>
    %cst_29 = arith.constant 0.000000e+00 : f32
    %150 = vector.broadcast %cst_29 : f32 to vector<8x128xf32>
    %151 = arith.maximumf %149, %150 : vector<8x128xf32>
    %152 = vector.broadcast %30 : f32 to vector<8x128xf32>
    %153 = arith.mulf %55, %152 : vector<8x128xf32>
    %154 = vector.broadcast %39 : f32 to vector<8x128xf32>
    %155 = arith.addf %153, %154 : vector<8x128xf32>
    %156 = vector.broadcast %31 : f32 to vector<8x128xf32>
    %157 = arith.mulf %61, %156 : vector<8x128xf32>
    %158 = arith.addf %155, %157 : vector<8x128xf32>
    %159 = vector.broadcast %32 : f32 to vector<8x128xf32>
    %160 = arith.mulf %67, %159 : vector<8x128xf32>
    %161 = arith.addf %158, %160 : vector<8x128xf32>
    %162 = vector.broadcast %33 : f32 to vector<8x128xf32>
    %163 = arith.mulf %73, %162 : vector<8x128xf32>
    %164 = arith.addf %161, %163 : vector<8x128xf32>
    %165 = vector.broadcast %34 : f32 to vector<8x128xf32>
    %166 = arith.mulf %79, %165 : vector<8x128xf32>
    %167 = arith.addf %164, %166 : vector<8x128xf32>
    %cst_30 = arith.constant 0.000000e+00 : f32
    %168 = vector.broadcast %cst_30 : f32 to vector<8x128xf32>
    %169 = arith.maximumf %167, %168 : vector<8x128xf32>
    %170 = vector.broadcast %40 : f32 to vector<8x128xf32>
    %171 = arith.mulf %97, %170 : vector<8x128xf32>
    %172 = vector.broadcast %45 : f32 to vector<8x128xf32>
    %173 = arith.addf %171, %172 : vector<8x128xf32>
    %174 = vector.broadcast %41 : f32 to vector<8x128xf32>
    %175 = arith.mulf %115, %174 : vector<8x128xf32>
    %176 = arith.addf %173, %175 : vector<8x128xf32>
    %177 = vector.broadcast %42 : f32 to vector<8x128xf32>
    %178 = arith.mulf %133, %177 : vector<8x128xf32>
    %179 = arith.addf %176, %178 : vector<8x128xf32>
    %180 = vector.broadcast %43 : f32 to vector<8x128xf32>
    %181 = arith.mulf %151, %180 : vector<8x128xf32>
    %182 = arith.addf %179, %181 : vector<8x128xf32>
    %183 = vector.broadcast %44 : f32 to vector<8x128xf32>
    %184 = arith.mulf %169, %183 : vector<8x128xf32>
    %185 = arith.addf %182, %184 : vector<8x128xf32>
    %c0_31 = arith.constant 0 : index
    %186 = arith.index_cast %47 : i32 to index
    %c0_32 = arith.constant 0 : index
    %187 = vector.load %arg8[%c0_31, %186, %c0_32] : memref<1x8x128xf32, #tpu.memory_space<vmem>>, vector<1x8x128xf32>
    %188 = vector.shape_cast %187 : vector<1x8x128xf32> to vector<8x128xf32>
    %189 = vector.shape_cast %185 : vector<8x128xf32> to vector<1x8x128xf32>
    tpu.vector_store %arg8[%c0_31, %186, %c0_32], %189 {strides = array<i32>} : memref<1x8x128xf32, #tpu.memory_space<vmem>>, vector<1x8x128xf32>,
    %c1_i32 = arith.constant 1 : i32
    return
  }
  func.func @transform_0(%arg0: i32) -> i32 {
    %c0_i32 = arith.constant 0 : i32
    %c0_i32_0 = arith.constant 0 : i32
    return %c0_i32 : i32
  }
  func.func @transform_1(%arg0: i32) -> i32 {
    %c0_i32 = arith.constant 0 : i32
    %c0_i32_0 = arith.constant 0 : i32
    return %c0_i32 : i32
  }
  func.func @transform_2(%arg0: i32) -> i32 {
    %c0_i32 = arith.constant 0 : i32
    %c0_i32_0 = arith.constant 0 : i32
    return %c0_i32 : i32
  }
  func.func @transform_3(%arg0: i32) -> i32 {
    %c0_i32 = arith.constant 0 : i32
    %c0_i32_0 = arith.constant 0 : i32
    return %c0_i32 : i32
  }
  func.func @transform_4(%arg0: i32) -> i32 {
    %c0_i32 = arith.constant 0 : i32
    %c0_i32_0 = arith.constant 0 : i32
    return %c0_i32 : i32
  }
  func.func @transform_5(%arg0: i32) -> i32 {
    %c0_i32 = arith.constant 0 : i32
    %c0_i32_0 = arith.constant 0 : i32
    return %c0_i32 : i32
  }
  func.func @transform_6(%arg0: i32) -> (i32, i32) {
    %c0_i32 = arith.constant 0 : i32
    %c0_i32_0 = arith.constant 0 : i32
    return %arg0, %c0_i32 : i32, i32
  }
  func.func @transform_7(%arg0: i32) -> (i32, i32, i32) {
    %c0_i32 = arith.constant 0 : i32
    %c0_i32_0 = arith.constant 0 : i32
    %c0_i32_1 = arith.constant 0 : i32
    return %c0_i32, %arg0, %c0_i32_0 : i32, i32, i32
  }
}

</mosaic_0001>

<bundles_post_ra>
// kernel: tpu_custom_call.1
= control target key start
LH: loop header
LB: loop body
LE: loop exit
PB: predicated region body
PF: predicated region fallthrough
CT: control target
= control target key end

     0   :  { %13 = vsyncpa [#allocation6], 0  ;;  %s688_s0 = inlined_call_operand.vmem [shape: f32[5], index: 0, kind: input, shape index: {}]   ;;  %s689_s1 = inlined_call_operand.vmem [shape: f32[5], index: 1, kind: input, shape index: {}]   ;;  %s690_s2 = inlined_call_operand.vmem [shape: f32[25], index: 2, kind: input, shape index: {}]   ;;  %s691_s3 = inlined_call_operand.vmem [shape: f32[5], index: 3, kind: input, shape index: {}]   ;;  %s692_s4 = inlined_call_operand.vmem [shape: f32[5], index: 4, kind: input, shape index: {}]   ;;  %s693_s5 = inlined_call_operand.<no memory space> [shape: f32[1], index: 5, kind: input, shape index: {}]   ;;  %s694_s6 = inlined_call_operand.hbm [shape: f32[8,128], index: 6, kind: input, shape index: {}]   ;;  %s695_s7 = inlined_call_operand.hbm [shape: f32[1,8,128], index: 7, kind: output, shape index: {}]  }
   0x1   :  { %14 = vsyncpa [#allocation8], 0 }
   0x2   :  { %15 = vsyncpa [#allocation11], 0 }
   0x3   :  { %16 = vsyncpa [#allocation4], 0  ;;  %s32_s26 = sshll.u32 %s689_s1, 4  ;;  %s33_s26 = int_to_ptr.vmem [resolvable:$true] %s32_s26 }
   0x4   :  { %17 = vsyncpa [#allocation5], 0  ;;  %s50_s29 = sshll.u32 %s691_s3, 4  ;;  %s460_s30 = smov [#allocation7]   ;;  %s51_s29 = int_to_ptr.vmem [resolvable:$true] %s50_s29 }
   0x5   :  { %35 = dma.vmem_to_smem %s33_s26, 16, %s460_s30, [#allocation8]  }
   0x6   :  { %s461_s8 = smov [#allocation10]   ;;  %s23_s11 = sshll.u32 %s688_s0, 4  ;;  %s24_s11 = int_to_ptr.vmem [resolvable:$true] %s23_s11 }
   0x7   :  { %53 = dma.vmem_to_smem %s51_s29, 16, %s461_s8, [#allocation11]  }
   0x8   :  { %s41_s1 = sshll.u32 %s690_s2, 4  ;;  %s462_s14 = smov [#allocation3]   ;;  %s42_s1 = int_to_ptr.vmem [resolvable:$true] %s41_s1 }
   0x9   :  { %26 = dma.vmem_to_smem %s24_s11, 16, %s462_s14, [#allocation6]  }
   0xa   :  { %s463_s15 = smov [#allocation9]   ;;  %s59_s17 = sshll.u32 %s692_s4, 4  ;;  %s60_s17 = int_to_ptr.vmem [resolvable:$true] %s59_s17 }
   0xb   :  { %44 = dma.vmem_to_smem %s42_s1, 16, %s463_s15, [#allocation8]  }
   0xc   :  { %s70_s20 = sshll.u32 %s694_s6, 4  ;;  %s464_s0 = smov [#allocation12]   ;;  %s71_s20 = int_to_ptr.hbm [resolvable:$true] %s70_s20 }
   0xd   :  { %62 = dma.vmem_to_smem %s60_s17, 16, %s464_s0, [#allocation11]  }
   0xe   :  { %s465_s21 = smov [#allocation13]  }
   0xf   :  { %s72_s22 = sshll.u32 %s465_s21, 4  ;;  %s73_s22 = int_to_ptr.vmem [resolvable:$true] %s72_s22 }
  0x10   :  { %75 = dma.hbm_to_vmem [thread:$0]  %s71_s20, 128, %s73_s22, [#allocation4]  }
  0x11   :  { %450 = dma.done.wait [#allocation6], 16  }
  0x12   :  { %451 = vsyncadd [#allocation6], 4294967280 }
  0x13   :  { %452 = dma.done.wait [#allocation8], 32  }
  0x14   :  { %453 = vsyncadd [#allocation8], 4294967264 }
  0x15   :  { %454 = dma.done.wait [#allocation11], 32  }
  0x16   :  { %455 = vsyncadd [#allocation11], 4294967264 }
  0x17   :  { %456 = dma.done.wait [#allocation4], 128  }
  0x18   :  { %457 = vsyncadd [#allocation4], 4294967168 }
  0x19   :  { %100 = sfence }
  0x1a   :  { %s101_s2 = sld [smem:[#allocation3]]  ;;  %v147_v0 = vld [vmem:[#allocation13] sm:$0xff] }
  0x1b   :  { %s525_s4 = sld [smem:[#allocation3 + $0x1]] }
  0x1c   :  { %s296_s6 = sld [smem:[#allocation3 + $0x2]] }
  0x1d   :  { %s297_s23 = sld [smem:[#allocation3 + $0x3]] }
  0x1e   :  { %s527_s24 = sld [smem:[#allocation3 + $0x4]] }
  0x1f   :  { %s529_s25 = sld [smem:[#allocation7]] }
  0x20   :  { %s531_s26 = sld [smem:[#allocation7 + $0x1]]  ;;  %v148_v1 = vstv %s101_s2 }
  0x21   :  { %s533_s27 = sld [smem:[#allocation7 + $0x2]]  ;;  %v153_v2 = vstv %s525_s4  ;;  %v149_v6 = vmul.f32 %v148_v1, %v147_v0 }
  0x22   :  { %s535_s28 = sld [smem:[#allocation7 + $0x3]]  ;;  %v158_v3 = vstv %s296_s6  ;;  %v154_v8 = vmul.f32 %v153_v2, %v147_v0 }
  0x23   :  { %s537_s29 = sld [smem:[#allocation7 + $0x4]]  ;;  %v163_v4 = vstv %s297_s23  ;;  %v159_v9 = vmul.f32 %v158_v3, %v147_v0 }
  0x24   :  { %s539_s30 = sld [smem:[#allocation9]]  ;;  %v168_v5 = vstv %s527_s24  ;;  %v164_v10 = vmul.f32 %v163_v4, %v147_v0 }
  0x25   :  { %s541_s8 = sld [smem:[#allocation9 + $0x1]]  ;;  %v150_v7 = vstv %s529_s25  ;;  %v169_v14 = vmul.f32 %v168_v5, %v147_v0 }
  0x26   :  { %s543_s9 = sld [smem:[#allocation9 + $0x2]]  ;;  %v155_v11 = vstv %s531_s26  ;;  %v151_v16 = vadd.f32 %v150_v7, %v149_v6 }
  0x27   :  { %s545_s10 = sld [smem:[#allocation9 + $0x3]]  ;;  %v160_v12 = vstv %s533_s27  ;;  %v156_v17 = vadd.f32 %v155_v11, %v154_v8 }
  0x28   :  { %s547_s11 = sld [smem:[#allocation9 + $0x4]]  ;;  %v165_v13 = vstv %s535_s28  ;;  %v161_v18 = vadd.f32 %v160_v12, %v159_v9  ;;  %v152_v21 = vmax.f32 %v151_v16, 0.0 }
  0x29   :  { %s549_s12 = sld [smem:[#allocation9 + $0x5]]  ;;  %v170_v15 = vstv %s537_s29  ;;  %v166_v19 = vadd.f32 %v165_v13, %v164_v10  ;;  %v588_v22 = vmax.f32 %v156_v17, 0.0 }
  0x2a   :  { %s551_s13 = sld [smem:[#allocation9 + $0x6]]  ;;  %v171_v20 = vadd.f32 %v170_v15, %v169_v14  ;;  %v590_v23 = vmax.f32 %v161_v18, 0.0  ;;  %v173_v25 = vstv %s539_s30 }
  0x2b   :  { %s553_s1 = sld [smem:[#allocation9 + $0x7]]  ;;  %v592_v24 = vmax.f32 %v166_v19, 0.0  ;;  %v177_v27 = vstv %s541_s8  ;;  %v174_v33 = vmul.f32 %v173_v25, %v152_v21 }
  0x2c   :  { %s555_s14 = sld [smem:[#allocation9 + $0x8]]  ;;  %v597_v26 = vmax.f32 %v171_v20, 0.0  ;;  %v180_v28 = vstv %s543_s9  ;;  %v178_v34 = vmul.f32 %v177_v27, %v588_v22 }
  0x2d   :  { %s557_s15 = sld [smem:[#allocation9 + $0x9]]  ;;  %v183_v29 = vstv %s545_s10  ;;  %v181_v35 = vmul.f32 %v180_v28, %v590_v23 }
  0x2e   :  { %s560_s3 = sld [smem:[#allocation9 + $0xa]]  ;;  %v186_v30 = vstv %s547_s11  ;;  %v184_v36 = vmul.f32 %v183_v29, %v592_v24 }
  0x2f   :  { %s563_s16 = sld [smem:[#allocation9 + $0xb]]  ;;  %v190_v31 = vstv %s549_s12  ;;  %v617_v37 = vmul.f32 %v186_v30, %v597_v26 }
  0x30   :  { %s565_s17 = sld [smem:[#allocation9 + $0xc]]  ;;  %v194_v32 = vstv %s551_s13  ;;  %v191_v38 = vmul.f32 %v190_v31, %v152_v21 }
  0x31   :  { %s568_s18 = sld [smem:[#allocation9 + $0xd]]  ;;  %v197_v39 = vstv %s553_s1  ;;  %v195_v41 = vmul.f32 %v194_v32, %v588_v22 }
  0x32   :  { %s573_s19 = sld [smem:[#allocation9 + $0xe]]  ;;  %v200_v40 = vstv %s555_s14  ;;  %v198_v49 = vmul.f32 %v197_v39, %v590_v23  ;;  %s466_s14 = smov [#allocation14]  }
  0x33   :  { %s576_s20 = sld [smem:[#allocation9 + $0xf]]  ;;  %v203_v42 = vstv %s557_s15  ;;  %v201_v50 = vmul.f32 %v200_v40, %v592_v24  ;;  %s280_s15 = sshll.u32 %s466_s14, 4  ;;  %s281_s15 = int_to_ptr.vmem [resolvable:$true] %s280_s15 }
  0x34   :  { %s578_s0 = sld [smem:[#allocation9 + $0x10]]  ;;  %v207_v43 = vstv %s560_s3  ;;  %v204_v53 = vmul.f32 %v203_v42, %v597_v26 }
  0x35   :  { %s580_s21 = sld [smem:[#allocation9 + $0x11]]  ;;  %v211_v44 = vstv %s563_s16  ;;  %v208_v54 = vmul.f32 %v207_v43, %v152_v21 }
  0x36   :  { %s582_s22 = sld [smem:[#allocation9 + $0x12]]  ;;  %v214_v45 = vstv %s565_s17  ;;  %v212_v55 = vmul.f32 %v211_v44, %v588_v22 }
  0x37   :  { %s584_s2 = sld [smem:[#allocation9 + $0x13]]  ;;  %v217_v46 = vstv %s568_s18  ;;  %v215_v57 = vmul.f32 %v214_v45, %v590_v23 }
  0x38   :  { %s586_s4 = sld [smem:[#allocation9 + $0x14]]  ;;  %v220_v47 = vstv %s573_s19  ;;  %v218_v58 = vmul.f32 %v217_v46, %v592_v24 }
  0x39   :  { %s595_s6 = sld [smem:[#allocation9 + $0x15]]  ;;  %v224_v48 = vstv %s576_s20  ;;  %v221_v59 = vmul.f32 %v220_v47, %v597_v26  ;;  %v260_v47 = vstv %s693_s5  ;;  %s282_s5 = sshll.u32 %s695_s7, 4  ;;  %s283_s5 = int_to_ptr.hbm [resolvable:$true] %s282_s5 }
  0x3a   :  { %s602_s23 = sld [smem:[#allocation9 + $0x16]]  ;;  %v228_v51 = vstv %s578_s0  ;;  %v225_v60 = vmul.f32 %v224_v48, %v152_v21 }
  0x3b   :  { %s606_s24 = sld [smem:[#allocation9 + $0x17]]  ;;  %v231_v52 = vstv %s580_s21  ;;  %v229_v62 = vmul.f32 %v228_v51, %v588_v22 }
  0x3c   :  { %s609_s25 = sld [smem:[#allocation9 + $0x18]]  ;;  %v232_v63 = vmul.f32 %v231_v52, %v590_v23  ;;  %v234_v3 = vstv %s582_s22 }
  0x3d   :  { %s614_s26 = sld [smem:[#allocation10]]  ;;  %v237_v7 = vstv %s584_s2  ;;  %v235_v27 = vmul.f32 %v234_v3, %v592_v24 }
  0x3e   :  { %s621_s27 = sld [smem:[#allocation10 + $0x1]]  ;;  %v241_v56 = vstv %s586_s4 }
  0x3f   :  { %s627_s28 = sld [smem:[#allocation10 + $0x2]]  ;;  %v245_v0 = vstv %s595_s6  ;;  %v242_v4 = vmul.f32 %v241_v56, %v152_v21 }
  0x40   :  { %s633_s29 = sld [smem:[#allocation10 + $0x3]]  ;;  %v248_v8 = vstv %s602_s23  ;;  %v246_v12 = vmul.f32 %v245_v0, %v588_v22 }
  0x41   :  { %s639_s30 = sld [smem:[#allocation10 + $0x4]]  ;;  %v251_v16 = vstv %s606_s24  ;;  %v249_v20 = vmul.f32 %v248_v8, %v590_v23  ;;  %v238_v23 = vmul.f32 %v237_v7, %v597_v26 }
  0x42   :  { %s653_s8 = sld [smem:[#allocation12]]  ;;  %v254_v28 = vstv %s609_s25  ;;  %v252_v31 = vmul.f32 %v251_v16, %v592_v24 }
  0x43   :  { %v175_v61 = vstv %s614_s26  ;;  %s658_s9 = sld [smem:[#allocation12 + $0x1]]  ;;  %v255_v39 = vmul.f32 %v254_v28, %v597_v26 }
  0x44   :  { %v176_v1 = vadd.f32 %v175_v61, %v174_v33  ;;  %v192_v2 = vstv %s621_s27  ;;  %s662_s10 = sld [smem:[#allocation12 + $0x2]] }
  0x45   :  { %v193_v5 = vadd.f32 %v192_v2, %v191_v38  ;;  %v209_v6 = vstv %s627_s28  ;;  %s667_s11 = sld [smem:[#allocation12 + $0x3]] }
  0x46   :  { %v179_v9 = vadd.f32 %v178_v34, %v176_v1  ;;  %v210_v10 = vadd.f32 %v209_v6, %v208_v54  ;;  %v226_v11 = vstv %s633_s29  ;;  %s672_s12 = sld [smem:[#allocation12 + $0x4]] }
  0x47   :  { %v196_v13 = vadd.f32 %v195_v41, %v193_v5  ;;  %v227_v14 = vadd.f32 %v226_v11, %v225_v60  ;;  %v243_v15 = vstv %s639_s30 }
  0x48   :  { %v182_v17 = vadd.f32 %v181_v35, %v179_v9  ;;  %v213_v18 = vadd.f32 %v212_v55, %v210_v10  ;;  %v244_v19 = vadd.f32 %v243_v15, %v242_v4  ;;  %v258_v41 = vstv %s653_s8 }
  0x49   :  { %v199_v21 = vadd.f32 %v198_v49, %v196_v13  ;;  %v230_v25 = vadd.f32 %v229_v62, %v227_v14  ;;  %v262_v44 = vstv %s658_s9 }
  0x4a   :  { %v185_v22 = vadd.f32 %v184_v36, %v182_v17  ;;  %v216_v29 = vadd.f32 %v215_v57, %v213_v18  ;;  %v247_v30 = vadd.f32 %v246_v12, %v244_v19 }
  0x4b   :  { %v202_v32 = vadd.f32 %v201_v50, %v199_v21  ;;  %v233_v33 = vadd.f32 %v232_v63, %v230_v25  ;;  %v268_v52 = vstv %s667_s11 }
  0x4c   :  { %v188_v34 = vadd.f32 %v617_v37, %v185_v22  ;;  %v219_v35 = vadd.f32 %v218_v58, %v216_v29  ;;  %v250_v38 = vadd.f32 %v249_v20, %v247_v30  ;;  %v265_v37 = vstv %s662_s10 }
  0x4d   :  { %v205_v40 = vadd.f32 %v204_v53, %v202_v32  ;;  %v236_v36 = vadd.f32 %v235_v27, %v233_v33  ;;  %v271_v56 = vstv %s672_s12 }
  0x4e   :  { %v189_v42 = vmax.f32 %v188_v34, 0.0  ;;  %v222_v43 = vadd.f32 %v221_v59, %v219_v35  ;;  %v253_v24 = vadd.f32 %v252_v31, %v250_v38 }
  0x4f   :  { %v206_v45 = vmax.f32 %v205_v40, 0.0  ;;  %v239_v46 = vadd.f32 %v238_v23, %v236_v36 }
  0x50   :  { %v223_v48 = vmax.f32 %v222_v43, 0.0  ;;  %v256_v49 = vadd.f32 %v255_v39, %v253_v24  ;;  %v259_v50 = vmul.f32 %v258_v41, %v189_v42 }
  0x51   :  { %v240_v26 = vmax.f32 %v239_v46, 0.0  ;;  %v263_v51 = vmul.f32 %v262_v44, %v206_v45 }
  0x52   :  { %v257_v53 = vmax.f32 %v256_v49, 0.0  ;;  %v261_v54 = vadd.f32 %v260_v47, %v259_v50  ;;  %v266_v55 = vmul.f32 %v265_v37, %v223_v48 }
  0x53   :  { %v269_v58 = vmul.f32 %v268_v52, %v240_v26 }
  0x54   :  { %v264_v57 = vadd.f32 %v263_v51, %v261_v54  ;;  %v272_v60 = vmul.f32 %v271_v56, %v257_v53 }
  0x56   :  { %v267_v59 = vadd.f32 %v266_v55, %v264_v57 }
  0x58   :  { %v270_v61 = vadd.f32 %v269_v58, %v267_v59 }
  0x5a   :  { %v273_v62 = vadd.f32 %v272_v60, %v270_v61 }
  0x5c   :  { %274 = vst [vmem:[#allocation14] sm:$0xff] %v273_v62 }
  0x5d   :  { %285 = dma.vmem_to_hbm [thread:$0]  %s281_s15, 128, %s283_s5, [#allocation5]  }
  0x5e   :  { %458 = dma.done.wait [#allocation5], 128  }
  0x5f   :  { %459 = vsyncadd [#allocation5], 4294967168 }
  0x60   :  { %290 = vsyncpa [#allocation4], 1 }
  0x61   :  { %291 = vsyncpa [#allocation5], 1 }
  0x62   :  { %292 = vsyncpa [#allocation6], 1 }
  0x63   :  { %293 = vsyncpa [#allocation8], 1 }
  0x64   :  { %294 = vsyncpa [#allocation11], 1 }

</bundles_post_ra>
